<compile_context>
chip_gen: v6e
topology: v6e:2x2x1
jax: 0.10.0
libtpu: 0.0.40
codegen_flags: <defaults>
</compile_context>

<pallas_src>
from functools import partial

import jax
import jax.numpy as jnp
from jax.experimental import pallas as pl
from jax.experimental.pallas import tpu as pltpu

LANE = 128  # vreg lane width


def _round_up(x, m):
    return (x + m - 1) // m * m


def dqn_v2_kernel(x_ref, w1_ref, b1_ref, w2_ref, b2_ref, w3_ref, b3_ref, out_ref):
    # Linear 1 + ReLU  (MXU matmul, f32 accumulate; bias row-broadcast on VPU)
    h1 = jnp.dot(x_ref[...], w1_ref[...], preferred_element_type=jnp.float32)
    h1 = jnp.maximum(h1 + b1_ref[...], 0.0)
    # Linear 2 + ReLU
    h2 = jnp.dot(h1, w2_ref[...], preferred_element_type=jnp.float32)
    h2 = jnp.maximum(h2 + b2_ref[...], 0.0)
    # Linear 3 (narrow N = action_size; masked store of a (tb, A) slab is
    # a handful of cycles, while the HBM writeback saving dominates)
    y = jnp.dot(h2, w3_ref[...], preferred_element_type=jnp.float32) + b3_ref[...]
    out_ref[...] = y.astype(out_ref.dtype)


def prepare_params(w1, b1, w2, b2, w3, b3):
    """One-time (init-time) padding of the hidden dims to the 128-lane width.

    Input feature dim (2*states_size) and output dim (action_size) are left
    unpadded; hidden dims 60 and 15 are zero-padded to 128 so intermediate
    activations are lane-dense and contribute exactly zero through the ReLUs.
    Call this once and reuse the returned params for every forward."""
    F, H1 = w1.shape
    H2, A = w2.shape[1], w3.shape[1]
    H1p, H2p = _round_up(H1, LANE), _round_up(H2, LANE)
    w1p = jnp.zeros((F, H1p), w1.dtype).at[:, :H1].set(w1)
    b1p = jnp.zeros((1, H1p), b1.dtype).at[:, :H1].set(b1)
    w2p = jnp.zeros((H1p, H2p), w2.dtype).at[:H1, :H2].set(w2)
    b2p = jnp.zeros((1, H2p), b2.dtype).at[:, :H2].set(b2)
    w3p = jnp.zeros((H2p, A), w3.dtype).at[:H2, :].set(w3)
    b3p = b3.reshape(1, A)
    return w1p, b1p, w2p, b2p, w3p, b3p


@partial(jax.jit, static_argnames=("block_b",))
def dqn_v2_forward(x, w1p, b1p, w2p, b2p, w3p, b3p, *, block_b=1024):
    """x: (B, 2*states_size) f32.  Padded params from prepare_params().
    Returns (B, action_size) f32."""
    B, F = x.shape
    H1p, H2p, A = w1p.shape[1], w2p.shape[1], w3p.shape[1]

    # Batch tile: 8-sublane aligned, at most block_b, collapses to a single
    # grid step for small batches (e.g. per-step action selection).
    tb = _round_up(min(block_b, B), 8)
    Bp = _round_up(B, tb)
    if Bp != B:  # pad only the batch remainder (rows) -- cheap
        x = jnp.pad(x, ((0, Bp - B), (0, 0)))

    grid = (Bp // tb,)
    const = lambda i: (0, 0)   # resident weights/biases across the whole grid

    out = pl.pallas_call(
        dqn_v2_kernel,
        out_shape=jax.ShapeDtypeStruct((Bp, A), jnp.float32),
        grid=grid,
        in_specs=[
            pl.BlockSpec((tb, F), lambda i: (i, 0)),    # x streamed per tile
            pl.BlockSpec((F, H1p), const),              # w1 (48, 128)
            pl.BlockSpec((1, H1p), const),              # b1
            pl.BlockSpec((H1p, H2p), const),            # w2 (128, 128)
            pl.BlockSpec((1, H2p), const),              # b2
            pl.BlockSpec((H2p, A), const),              # w3 (128, A)
            pl.BlockSpec((1, A), const),                # b3
        ],
        out_specs=pl.BlockSpec((tb, A), lambda i: (i, 0)),
        compiler_params=pltpu.CompilerParams(
            dimension_semantics=("parallel",)),          # megacore on v7x
    )(x, w1p, b1p, w2p, b2p, w3p, b3p)

    if Bp != B:
        out = out[:B]
    return out


def init_params(key, states_size, action_size, h1=60, h2=15):
    """Deterministic init mimicking torch.nn.Linear's U(-1/sqrt(fan_in), ...).
    Weights returned as (in_features, out_features) (transposed vs torch)."""
    in_dim = states_size * 2
    ks = jax.random.split(key, 6)
    bnd1 = 1.0 / jnp.sqrt(in_dim)
    bnd2 = 1.0 / jnp.sqrt(h1)
    bnd3 = 1.0 / jnp.sqrt(h2)
    w1 = jax.random.uniform(ks[0], (in_dim, h1), jnp.float32, -bnd1, bnd1)
    b1 = jax.random.uniform(ks[1], (1, h1), jnp.float32, -bnd1, bnd1)
    w2 = jax.random.uniform(ks[2], (h1, h2), jnp.float32, -bnd2, bnd2)
    b2 = jax.random.uniform(ks[3], (1, h2), jnp.float32, -bnd2, bnd2)
    w3 = jax.random.uniform(ks[4], (h2, action_size), jnp.float32, -bnd3, bnd3)
    b3 = jax.random.uniform(ks[5], (1, action_size), jnp.float32, -bnd3, bnd3)
    return w1, b1, w2, b2, w3, b3


def _reference(x, w1, b1, w2, b2, w3, b3):
    h1 = jnp.maximum(x @ w1 + b1, 0.0)
    h2 = jnp.maximum(h1 @ w2 + b2, 0.0)
    return h2 @ w3 + b3


if __name__ == "__main__":
    # Shapes consistent with the module: states_size=24 (input dim 48),
    # action_size=4.
    S, A = 24, 4
    key = jax.random.PRNGKey(0)
    k_x, k_x2, k_p = jax.random.split(key, 3)
    params = init_params(k_p, S, A)
    padded = prepare_params(*params)   # hoisted: padded once, reused below

    # --- small correctness case (grid=(1,), per-step action selection) ------
    B = 8
    x = jax.random.normal(k_x, (B, 2 * S), jnp.float32)
    out = jax.block_until_ready(dqn_v2_forward(x, *padded))
    ref = _reference(x, *params)
    assert out.shape == (B, A)
    assert jnp.allclose(out, ref, atol=1e-4, rtol=1e-4)

    # --- larger batch exercising the batch grid (non-multiple of the tile) ---
    B2 = 2600
    x2 = jax.random.normal(k_x2, (B2, 2 * S), jnp.float32)
    out2 = jax.block_until_ready(dqn_v2_forward(x2, *padded, block_b=1024))
    ref2 = _reference(x2, *params)
    assert out2.shape == (B2, A)
    assert jnp.allclose(out2, ref2, atol=1e-4, rtol=1e-4)

    print("KERNEL_OK")
</pallas_src>

<mosaic_0001>
module attributes {stable_mosaic.version = 11 : i64} {
  func.func @dqn_v2_kernel(%arg0: i32, %arg1: memref<8x48xf32, #tpu.memory_space<vmem>>, %arg2: memref<48x128xf32, #tpu.memory_space<vmem>>, %arg3: memref<1x128xf32, #tpu.memory_space<vmem>>, %arg4: memref<128x128xf32, #tpu.memory_space<vmem>>, %arg5: memref<1x128xf32, #tpu.memory_space<vmem>>, %arg6: memref<128x4xf32, #tpu.memory_space<vmem>>, %arg7: memref<1x4xf32, #tpu.memory_space<vmem>>, %arg8: memref<8x4xf32, #tpu.memory_space<vmem>>) attributes {dimension_semantics = [#tpu.dimension_semantics<parallel>], iteration_bounds = array<i64: 1>, scalar_prefetch = 0 : i64, scratch_operands = 0 : i64, tpu.core_type = #tpu.core_type<tc>, window_params = [{transform_indices = @transform_0, window_bounds = array<i64: 8, 48>}, {pipeline_mode = #tpu.pipeline_mode<synchronous>, transform_indices = @transform_1, window_bounds = array<i64: 48, 128>}, {pipeline_mode = #tpu.pipeline_mode<synchronous>, transform_indices = @transform_2, window_bounds = array<i64: 1, 128>}, {pipeline_mode = #tpu.pipeline_mode<synchronous>, transform_indices = @transform_3, window_bounds = array<i64: 128, 128>}, {pipeline_mode = #tpu.pipeline_mode<synchronous>, transform_indices = @transform_4, window_bounds = array<i64: 1, 128>}, {pipeline_mode = #tpu.pipeline_mode<synchronous>, transform_indices = @transform_5, window_bounds = array<i64: 128, 4>}, {pipeline_mode = #tpu.pipeline_mode<synchronous>, transform_indices = @transform_6, window_bounds = array<i64: 1, 4>}, {transform_indices = @transform_7, window_bounds = array<i64: 8, 4>}]} {
    %c0 = arith.constant 0 : index
    %c0_0 = arith.constant 0 : index
    %0 = vector.load %arg1[%c0, %c0_0] : memref<8x48xf32, #tpu.memory_space<vmem>>, vector<8x48xf32>
    %c0_1 = arith.constant 0 : index
    %c0_2 = arith.constant 0 : index
    %1 = vector.load %arg2[%c0_1, %c0_2] : memref<48x128xf32, #tpu.memory_space<vmem>>, vector<48x128xf32>
    %cst = arith.constant dense<0.000000e+00> : vector<8x128xf32>
    %2 = tpu.matmul %0, %1, %cst {dimension_numbers = #tpu.dot_dimension_numbers<[1], [0], [0], [1], [0, 0, 1, 1], [], []>} : vector<8x48xf32>, vector<48x128xf32>, vector<8x128xf32> -> vector<8x128xf32>
    %c0_3 = arith.constant 0 : index
    %c0_4 = arith.constant 0 : index
    %3 = vector.load %arg3[%c0_3, %c0_4] : memref<1x128xf32, #tpu.memory_space<vmem>>, vector<1x128xf32>
    %4 = vector.broadcast %3 : vector<1x128xf32> to vector<8x128xf32>
    %5 = arith.addf %2, %4 : vector<8x128xf32>
    %cst_5 = arith.constant 0.000000e+00 : f32
    %6 = vector.broadcast %cst_5 : f32 to vector<8x128xf32>
    %7 = arith.maximumf %5, %6 : vector<8x128xf32>
    %c0_6 = arith.constant 0 : index
    %c0_7 = arith.constant 0 : index
    %8 = vector.load %arg4[%c0_6, %c0_7] : memref<128x128xf32, #tpu.memory_space<vmem>>, vector<128x128xf32>
    %cst_8 = arith.constant dense<0.000000e+00> : vector<8x128xf32>
    %9 = tpu.matmul %7, %8, %cst_8 {dimension_numbers = #tpu.dot_dimension_numbers<[1], [0], [0], [1], [0, 0, 1, 1], [], []>} : vector<8x128xf32>, vector<128x128xf32>, vector<8x128xf32> -> vector<8x128xf32>
    %c0_9 = arith.constant 0 : index
    %c0_10 = arith.constant 0 : index
    %10 = vector.load %arg5[%c0_9, %c0_10] : memref<1x128xf32, #tpu.memory_space<vmem>>, vector<1x128xf32>
    %11 = vector.broadcast %10 : vector<1x128xf32> to vector<8x128xf32>
    %12 = arith.addf %9, %11 : vector<8x128xf32>
    %cst_11 = arith.constant 0.000000e+00 : f32
    %13 = vector.broadcast %cst_11 : f32 to vector<8x128xf32>
    %14 = arith.maximumf %12, %13 : vector<8x128xf32>
    %c0_12 = arith.constant 0 : index
    %c0_13 = arith.constant 0 : index
    %15 = vector.load %arg6[%c0_12, %c0_13] : memref<128x4xf32, #tpu.memory_space<vmem>>, vector<128x4xf32>
    %cst_14 = arith.constant dense<0.000000e+00> : vector<8x4xf32>
    %16 = tpu.matmul %14, %15, %cst_14 {dimension_numbers = #tpu.dot_dimension_numbers<[1], [0], [0], [1], [0, 0, 1, 1], [], []>} : vector<8x128xf32>, vector<128x4xf32>, vector<8x4xf32> -> vector<8x4xf32>
    %c0_15 = arith.constant 0 : index
    %c0_16 = arith.constant 0 : index
    %17 = vector.load %arg7[%c0_15, %c0_16] : memref<1x4xf32, #tpu.memory_space<vmem>>, vector<1x4xf32>
    %18 = vector.broadcast %17 : vector<1x4xf32> to vector<8x4xf32>
    %19 = arith.addf %16, %18 : vector<8x4xf32>
    %c0_17 = arith.constant 0 : index
    %c0_18 = arith.constant 0 : index
    %20 = vector.load %arg8[%c0_17, %c0_18] : memref<8x4xf32, #tpu.memory_space<vmem>>, vector<8x4xf32>
    tpu.vector_store %arg8[%c0_17, %c0_18], %19 {strides = array<i32>} : memref<8x4xf32, #tpu.memory_space<vmem>>, vector<8x4xf32>,
    return
  }
  func.func @transform_0(%arg0: i32) -> (i32, i32) {
    %c0_i32 = arith.constant 0 : i32
    %c0_i32_0 = arith.constant 0 : i32
    return %arg0, %c0_i32 : i32, i32
  }
  func.func @transform_1(%arg0: i32) -> (i32, i32) {
    %c0_i32 = arith.constant 0 : i32
    %c0_i32_0 = arith.constant 0 : i32
    %c0_i32_1 = arith.constant 0 : i32
    return %c0_i32, %c0_i32_0 : i32, i32
  }
  func.func @transform_2(%arg0: i32) -> (i32, i32) {
    %c0_i32 = arith.constant 0 : i32
    %c0_i32_0 = arith.constant 0 : i32
    %c0_i32_1 = arith.constant 0 : i32
    return %c0_i32, %c0_i32_0 : i32, i32
  }
  func.func @transform_3(%arg0: i32) -> (i32, i32) {
    %c0_i32 = arith.constant 0 : i32
    %c0_i32_0 = arith.constant 0 : i32
    %c0_i32_1 = arith.constant 0 : i32
    return %c0_i32, %c0_i32_0 : i32, i32
  }
  func.func @transform_4(%arg0: i32) -> (i32, i32) {
    %c0_i32 = arith.constant 0 : i32
    %c0_i32_0 = arith.constant 0 : i32
    %c0_i32_1 = arith.constant 0 : i32
    return %c0_i32, %c0_i32_0 : i32, i32
  }
  func.func @transform_5(%arg0: i32) -> (i32, i32) {
    %c0_i32 = arith.constant 0 : i32
    %c0_i32_0 = arith.constant 0 : i32
    %c0_i32_1 = arith.constant 0 : i32
    return %c0_i32, %c0_i32_0 : i32, i32
  }
  func.func @transform_6(%arg0: i32) -> (i32, i32) {
    %c0_i32 = arith.constant 0 : i32
    %c0_i32_0 = arith.constant 0 : i32
    %c0_i32_1 = arith.constant 0 : i32
    return %c0_i32, %c0_i32_0 : i32, i32
  }
  func.func @transform_7(%arg0: i32) -> (i32, i32) {
    %c0_i32 = arith.constant 0 : i32
    %c0_i32_0 = arith.constant 0 : i32
    return %arg0, %c0_i32 : i32, i32
  }
}

</mosaic_0001>

<bundles_post_ra>
// kernel: dqn_v2_forward.1
= control target key start
LH: loop header
LB: loop body
LE: loop exit
PB: predicated region body
PF: predicated region fallthrough
CT: control target
= control target key end

     0   :  { %12 = vsyncpa [#allocation3], 0  ;;  %s720_s0 = inlined_call_operand.vmem [shape: f32[8,48], index: 0, kind: input, shape index: {}]   ;;  %s721_s1 = inlined_call_operand.hbm [shape: f32[48,128], index: 1, kind: input, shape index: {}]   ;;  %s722_s2 = inlined_call_operand.vmem [shape: f32[1,128], index: 2, kind: input, shape index: {}]   ;;  %s723_s3 = inlined_call_operand.vmem [shape: f32[128,128], index: 3, kind: input, shape index: {}]   ;;  %s724_s4 = inlined_call_operand.hbm [shape: f32[1,128], index: 4, kind: input, shape index: {}]   ;;  %s725_s5 = inlined_call_operand.vmem [shape: f32[128,4], index: 5, kind: input, shape index: {}]   ;;  %s726_s6 = inlined_call_operand.vmem [shape: f32[1,4], index: 6, kind: input, shape index: {}]   ;;  %s727_s7 = inlined_call_operand.vmem [shape: f32[8,4], index: 7, kind: output, shape index: {}]  }
   0x1   :  { %13 = vsyncpa [#allocation5], 0  ;;  %s516_s24 = smov [#allocation2]  }
   0x2   :  { %s21_s25 = sshll.u32 %s516_s24, 4  ;;  %s22_s25 = int_to_ptr.vmem [resolvable:$true] %s21_s25 }
   0x3   :  { %s480_s26 = scalar_lea.vmem %s22_s25, 768  ;;  %p485_p1 = scmp.lt.s32.totalorder %s22_s25, %s22_s25 }
   0x4   :  { %p481_p0 = scmp.ne.s32.totalorder %s22_s25, %s480_s26  ;;  %p486_p2 = scmp.lt.s32.totalorder %s480_s26, %s480_s26 }
   0x6   :  { %p487_p3 = por %p486_p2, %p485_p1 }
   0x8   :  { %p488_p4 = pnand %p487_p3, %p481_p0 }
   0xa   :  { %491 = shalt.err (!%p488_p4)
}
   0xb   :  { %s517_s27 = smov 128   ;;  %s518_s28 = smov 8  }
   0xc   :  { %27 = dma.hbm_to_vmem [thread:$0]  %s721_s1, 768, %s22_s25, [#allocation3], %s517_s27, %s517_s27, %s518_s28  }
   0xd   :  { %s519_s8 = smov [#allocation4]  }
   0xe   :  { %s38_s9 = sshll.u32 %s519_s8, 4  ;;  %s39_s9 = int_to_ptr.vmem [resolvable:$true] %s38_s9 }
   0xf   :  { %s500_s10 = scalar_lea.vmem %s39_s9, 16  ;;  %s504_s11 = scalar_lea.vmem %s39_s9, 32 }
  0x10   :  { %p501_p5 = scmp.ne.s32.totalorder %s39_s9, %s500_s10  ;;  %p505_p6 = scmp.lt.s32.totalorder %s39_s9, %s39_s9 }
  0x11   :  { %p506_p7 = scmp.lt.s32.totalorder %s504_s11, %s500_s10 }
  0x13   :  { %p507_p8 = por %p506_p7, %p505_p6 }
  0x15   :  { %p508_p9 = pnand %p507_p8, %p501_p5 }
  0x17   :  { %511 = shalt.err (!%p508_p9)
}
  0x18   :  { %41 = dma.hbm_to_vmem [thread:$0]  %s724_s4, 16, %s39_s9, [#allocation5]  }
  0x19   :  { %512 = dma.done.wait [#allocation3], 768  }
  0x1a   :  { %513 = vsyncadd [#allocation3], 4294966528 }
  0x1b   :  { %514 = dma.done.wait [#allocation5], 16  }
  0x1c   :  { %515 = vsyncadd [#allocation5], 4294967280  ;;  %v520_v0 = vmov 0.0   ;;  %vm521_vm0 = vmmov 0   ;;  %v58_v1 = vld [vmem:[#allocation2 + $0x28] sm:$0xff]  ;;  %v57_v2 = vld [vmem:[#allocation2 + $0x20] sm:$0xff] }
  0x1d   :  { %381 = vmatprep.subr.mxu0 %v520_v0  ;;  %393 = vmatprep.mubr.msk.f32.mxu0 %vm521_vm0, %v520_v0  ;;  %v56_v3 = vld [vmem:[#allocation2 + $0x18] sm:$0xff]  ;;  %v155_v5 = vld [vmem:[%s723_s3 + $0x70] sm:$0xff]  ;;  %v154_v7 = vld [vmem:[%s723_s3 + $0x68] sm:$0xff]  ;;  %vm66_vm1 = vcmask 392192   ;;  %vm328_vm2 = vcmask 31744  }
  0x1e   :  { %396 = vmatprep.subr.mxu1 %v520_v0  ;;  %428 = vmatprep.mubr.msk.f32.mxu1 %vm521_vm0, %v520_v0  ;;  %v156_v4 = vld [vmem:[%s723_s3 + $0x78] sm:$0xff]  ;;  %v55_v6 = vld [vmem:[#allocation2 + $0x10] sm:$0xff]  ;;  %v54_v8 = vld [vmem:[#allocation2 + $0x8] sm:$0xff] }
  0x1f   :  { %382 = vmatpush3.msra.mxu0 %v58_v1  ;;  %397 = vmatpush3.msra.mxu1 %v156_v4  ;;  %v153_v9 = vld [vmem:[%s723_s3 + $0x60] sm:$0xff]  ;;  %v152_v11 = vld [vmem:[%s723_s3 + $0x58] sm:$0xff]  ;;  %v151_v13 = vld [vmem:[%s723_s3 + $0x50] sm:$0xff] }
  0x20   :  { %383 = vmatprep.subr.mxu0 %v520_v0  ;;  %398 = vmatprep.subr.mxu1 %v520_v0  ;;  %v53_v10 = vld [vmem:[#allocation2] sm:$0xff]  ;;  %v150_v14 = vld [vmem:[%s723_s3 + $0x48] sm:$0xff]  ;;  %v148_v16 = vld [vmem:[%s723_s3 + $0x38] sm:$0xff] }
  0x21   :  { %384 = vmatpush3.msra.mxu0 %v57_v2  ;;  %399 = vmatpush3.msra.mxu1 %v155_v5  ;;  %v52_v12 = vld [vmem:[%s720_s0] sm:$0xff]  ;;  %v147_v17 = vld [vmem:[%s723_s3 + $0x30] sm:$0xff]  ;;  %v146_v18 = vld [vmem:[%s723_s3 + $0x28] sm:$0xff] }
  0x22   :  { %385 = vmatprep.subr.mxu0 %v520_v0  ;;  %400 = vmatprep.subr.mxu1 %v520_v0  ;;  %v149_v15 = vld [vmem:[%s723_s3 + $0x40] sm:$0xff]  ;;  %v144_v20 = vld [vmem:[%s723_s3 + $0x18] sm:$0xff]  ;;  %v143_v21 = vld [vmem:[%s723_s3 + $0x10] sm:$0xff] }
  0x23   :  { %386 = vmatpush3.msra.mxu0 %v56_v3  ;;  %401 = vmatpush3.msra.mxu1 %v154_v7  ;;  %v145_v19 = vld [vmem:[%s723_s3 + $0x20] sm:$0xff]  ;;  %v142_v22 = vld [vmem:[%s723_s3 + $0x8] sm:$0xff]  ;;  %v250_v24 = vld [vmem:[%s725_s5 + $0x78] sm:$0xff] }
  0x24   :  { %387 = vmatprep.subr.mxu0 %v520_v0  ;;  %402 = vmatprep.subr.mxu1 %v520_v0  ;;  %v141_v23 = vld [vmem:[%s723_s3] sm:$0xff]  ;;  %v249_v25 = vld [vmem:[%s725_s5 + $0x70] sm:$0xff]  ;;  %v248_v26 = vld [vmem:[%s725_s5 + $0x68] sm:$0xff] }
  0x25   :  { %388 = vmatpush3.msra.mxu0 %v55_v6  ;;  %403 = vmatpush3.msra.mxu1 %v153_v9  ;;  %v247_v27 = vld [vmem:[%s725_s5 + $0x60] sm:$0xff]  ;;  %v246_v28 = vld [vmem:[%s725_s5 + $0x58] sm:$0xff]  ;;  %v245_v29 = vld [vmem:[%s725_s5 + $0x50] sm:$0xff] }
  0x26   :  { %389 = vmatprep.subr.mxu0 %v520_v0  ;;  %404 = vmatprep.subr.mxu1 %v520_v0  ;;  %v244_v30 = vld [vmem:[%s725_s5 + $0x48] sm:$0xff]  ;;  %v243_v31 = vld [vmem:[%s725_s5 + $0x40] sm:$0xff]  ;;  %v242_v32 = vld [vmem:[%s725_s5 + $0x38] sm:$0xff] }
  0x27   :  { %390 = vmatpush3.msra.mxu0 %v54_v8  ;;  %405 = vmatpush3.msra.mxu1 %v152_v11  ;;  %v241_v33 = vld [vmem:[%s725_s5 + $0x30] sm:$0xff]  ;;  %v240_v34 = vld [vmem:[%s725_s5 + $0x28] sm:$0xff]  ;;  %v239_v35 = vld [vmem:[%s725_s5 + $0x20] sm:$0xff] }
  0x28   :  { %391 = vmatprep.subr.mxu0 %v520_v0  ;;  %406 = vmatprep.subr.mxu1 %v520_v0  ;;  %v238_v36 = vld [vmem:[%s725_s5 + $0x18] sm:$0xff]  ;;  %v336_v37 = vld [vmem:[%s722_s2] ss:$0 sm:$0xff]  ;;  %v237_v42 = vld [vmem:[%s725_s5 + $0x10] sm:$0xff] }
  0x29   :  { %392 = vmatpush3.msra.mxu0 %v53_v10  ;;  %407 = vmatpush3.msra.mxu1 %v151_v13  ;;  %v236_v43 = vld [vmem:[%s725_s5 + $0x8] sm:$0xff]  ;;  %v235_v44 = vld [vmem:[%s725_s5] sm:$0xff]  ;;  %v338_v45 = vld [vmem:[#allocation4] ss:$0 sm:$0xff] }
  0x2a   :  { %394 = vmatmul.mubr.msk.f32.vlgmr.msra.gmra.mxu0 %vm66_vm1, %v52_v12  ;;  %431 = vmatprep.subr.mxu0 %v520_v0  ;;  %v339_v50 = vld [vmem:[%s726_s6] ss:$0 sm:$0xff] }
  0x2b   :  { %408 = vmatprep.subr.mxu1 %v520_v0  ;;  %463 = vmatprep.mubr.msk.f32.mxu0 %vm521_vm0, %v520_v0 }
  0x2c   :  { %409 = vmatpush3.msra.mxu1 %v150_v14  ;;  %432 = vmatpush3.msra.mxu0 %v250_v24 }
  0x2d   :  { %410 = vmatprep.subr.mxu1 %v520_v0  ;;  %433 = vmatprep.subr.mxu0 %v520_v0 }
  0x2e   :  { %411 = vmatpush3.msra.mxu1 %v149_v15  ;;  %434 = vmatpush3.msra.mxu0 %v249_v25 }
  0x2f   :  { %412 = vmatprep.subr.mxu1 %v520_v0  ;;  %435 = vmatprep.subr.mxu0 %v520_v0 }
  0x30   :  { %413 = vmatpush3.msra.mxu1 %v148_v16  ;;  %436 = vmatpush3.msra.mxu0 %v248_v26 }
  0x31   :  { %414 = vmatprep.subr.mxu1 %v520_v0  ;;  %437 = vmatprep.subr.mxu0 %v520_v0 }
  0x32   :  { %415 = vmatpush3.msra.mxu1 %v147_v17  ;;  %438 = vmatpush3.msra.mxu0 %v247_v27 }
  0x33   :  { %416 = vmatprep.subr.mxu1 %v520_v0  ;;  %439 = vmatprep.subr.mxu0 %v520_v0 }
  0x34   :  { %417 = vmatpush3.msra.mxu1 %v146_v18  ;;  %440 = vmatpush3.msra.mxu0 %v246_v28 }
  0x35   :  { %418 = vmatprep.subr.mxu1 %v520_v0  ;;  %441 = vmatprep.subr.mxu0 %v520_v0 }
  0x36   :  { %419 = vmatpush3.msra.mxu1 %v145_v19  ;;  %442 = vmatpush3.msra.mxu0 %v245_v29 }
  0x37   :  { %420 = vmatprep.subr.mxu1 %v520_v0  ;;  %443 = vmatprep.subr.mxu0 %v520_v0 }
  0x38   :  { %421 = vmatpush3.msra.mxu1 %v144_v20  ;;  %444 = vmatpush3.msra.mxu0 %v244_v30 }
  0x39   :  { %422 = vmatprep.subr.mxu1 %v520_v0  ;;  %445 = vmatprep.subr.mxu0 %v520_v0 }
  0x3a   :  { %423 = vmatpush3.msra.mxu1 %v143_v21  ;;  %446 = vmatpush3.msra.mxu0 %v243_v31 }
  0x3b   :  { %424 = vmatprep.subr.mxu1 %v520_v0  ;;  %447 = vmatprep.subr.mxu0 %v520_v0 }
  0x3c   :  { %425 = vmatpush3.msra.mxu1 %v142_v22  ;;  %448 = vmatpush3.msra.mxu0 %v242_v32 }
  0x3d   :  { %426 = vmatprep.subr.mxu1 %v520_v0  ;;  %449 = vmatprep.subr.mxu0 %v520_v0 }
  0x3e   :  { %427 = vmatpush3.msra.mxu1 %v141_v23  ;;  %450 = vmatpush3.msra.mxu0 %v241_v33 }
  0x3f   :  { %451 = vmatprep.subr.mxu0 %v520_v0 }
  0x40   :  { %452 = vmatpush3.msra.mxu0 %v240_v34 }
  0x41   :  { %453 = vmatprep.subr.mxu0 %v520_v0 }
  0x42   :  { %454 = vmatpush3.msra.mxu0 %v239_v35 }
  0x43   :  { %455 = vmatprep.subr.mxu0 %v520_v0 }
  0x44   :  { %456 = vmatpush3.msra.mxu0 %v238_v36 }
  0x45   :  { %457 = vmatprep.subr.mxu0 %v520_v0 }
  0x46   :  { %458 = vmatpush3.msra.mxu0 %v237_v42 }
  0x47   :  { %459 = vmatprep.subr.mxu0 %v520_v0 }
  0x48   :  { %460 = vmatpush3.msra.mxu0 %v236_v43 }
  0x49   :  { %461 = vmatprep.subr.mxu0 %v520_v0 }
  0x4a   :  { %462 = vmatpush3.msra.mxu0 %v235_v44 }
  0xea   :  { %v136_v38 = vpop.f32.mrf.mxu0 }
  0xeb   :  { %v137_v39 = vadd.f32 %v336_v37, %v136_v38 }
  0xec   :  { %v395_v40 = vpop.f32.mrf.mxu0 }
  0xed   :  { %v140_v41 = vmax.f32 %v137_v39, 0.0 }
  0xef   :  { %429 = vmatmul.mubr.f32.vlgmr.msra.gmra.mxu1 %v140_v41 }
 0x1af   :  { %v230_v46 = vpop.f32.mrf.mxu1 }
 0x1b0   :  { %v231_v47 = vadd.f32 %v338_v45, %v230_v46 }
 0x1b1   :  { %v430_v48 = vpop.f32.mrf.mxu1 }
 0x1b2   :  { %v234_v49 = vmax.f32 %v231_v47, 0.0 }
 0x1b4   :  { %464 = vmatmul.mubr.f32.vlgmr.msra.gmra.mxu0 %v234_v49 }
 0x274   :  { %v324_v51 = vpop.f32.mrf.mxu0 }
 0x275   :  { %v325_v52 = vadd.f32 %v339_v50, %v324_v51 }
 0x276   :  { %v465_v53 = vpop.f32.mrf.mxu0 }
 0x277   :  { %329 = vst.msk [vmem:[%s727_s7] sm:$0xff] %vm328_vm2, %v325_v52 }
 0x278   :  { %334 = vsyncpa [#allocation3], 1 }
 0x279   :  { %335 = vsyncpa [#allocation5], 1 }

</bundles_post_ra>
